<compile_context>
chip_gen: v6e
topology: v6e:2x2x1
jax: 0.10.0
libtpu: 0.0.40
codegen_flags: <defaults>
</compile_context>

<pallas_src>
import functools

import jax
import jax.numpy as jnp
from jax.experimental import pallas as pl
from jax.experimental.pallas import tpu as pltpu


def _pick_tile(extent, base, cap):
    """Largest multiple of `base` that divides `extent` and is <= cap.

    Falls back to the full extent (always legal: block dim == array dim)."""
    if extent % base != 0:
        return extent
    best = None
    d = base
    limit = min(extent, max(base, cap))
    while d <= limit:
        if extent % d == 0:
            best = d
        d += base
    return best if best is not None else extent


# ----------------------------------------------------------------------------
# Stage 1: batched global-average-pool + linear (scale & shift for ALL B).
# Grid: spatial chunks of H*W ("arbitrary" reduction axis).
# ----------------------------------------------------------------------------
def _pool_linear_kernel(feat_ref, ws_ref, wsh_ref, bs_ref, bsh_ref,
                        scale_ref, shift_ref, sum_sc, *, inv_hw):
    # feat_ref : (B, C_enc, s_chunk)  current spatial chunk for all batches
    # ws_ref   : (C_enc, T)  scale weights      wsh_ref : (C_enc, T) shift weights
    # bs_ref   : (1, T)      scale bias         bsh_ref : (1, T)     shift bias
    # scale_ref/shift_ref : (B, T) f32 outputs (resident across the grid)
    # sum_sc   : (B, C_enc) f32 scratch accumulator
    k = pl.program_id(0)

    @pl.when(k == 0)
    def _init():
        sum_sc[...] = jnp.zeros_like(sum_sc)

    # Partial spatial sum for this chunk, accumulated in f32 (bf16-safe).
    sum_sc[...] += jnp.sum(feat_ref[...].astype(jnp.float32), axis=-1)

    @pl.when(k == pl.num_programs(0) - 1)
    def _finalize():
        pooled = sum_sc[...] * inv_hw                      # (B, C_enc) true mean
        scale_ref[...] = (
            jnp.dot(pooled, ws_ref[...].astype(jnp.float32),
                    preferred_element_type=jnp.float32)
            + bs_ref[...].astype(jnp.float32))
        shift_ref[...] = (
            jnp.dot(pooled, wsh_ref[...].astype(jnp.float32),
                    preferred_element_type=jnp.float32)
            + bsh_ref[...].astype(jnp.float32))


# ----------------------------------------------------------------------------
# Stage 2: FiLM apply on a lane/sublane-dense 2D layout (B*T, Hd*Wd).
# ----------------------------------------------------------------------------
def _film_apply_kernel(scale_ref, shift_ref, disp_ref, out_ref):
    # scale_ref/shift_ref : (Rt, 1) f32 per-row modulation
    # disp_ref/out_ref    : (Rt, Hd*Wd)
    d = disp_ref[...].astype(jnp.float32)
    out_ref[...] = (d * scale_ref[...] + shift_ref[...]).astype(out_ref.dtype)


def film_forward(features, disparity, weight, bias,
                 *, vmem_budget_bytes=16 * 1024 * 1024):
    """features: (B, C_enc, H, W); disparity: (B, T, Hd, Wd);
       weight: (2T, C_enc) (PyTorch layout); bias: (2T,)."""
    B, C_enc, H, W = features.shape
    Bd, T, Hd, Wd = disparity.shape
    assert Bd == B
    HW = H * W
    S = Hd * Wd
    R = B * T

    feat3 = features.reshape(B, C_enc, HW)
    w_t = weight.T                                   # (C_enc, 2T)
    w_scale = w_t[:, :T]                             # split host-side: no in-kernel
    w_shift = w_t[:, T:]                             # lane-offset slicing
    b_scale = bias[:T].reshape(1, T).astype(jnp.float32)
    b_shift = bias[T:].reshape(1, T).astype(jnp.float32)

    # ---- Stage 1: tiled pooling reduction + tiny matmul, once for all B ----
    bytes_per_lane = B * C_enc * feat3.dtype.itemsize * 2     # x2: double buffer
    lane_cap = max(128, min(4096,
                            (vmem_budget_bytes // max(bytes_per_lane, 1)) // 128 * 128))
    s_chunk = _pick_tile(HW, 128, lane_cap)
    n_chunks = HW // s_chunk

    cost1 = pl.CostEstimate(
        flops=int(B * C_enc * HW + 2 * B * C_enc * 2 * T),
        transcendentals=0,
        bytes_accessed=int(feat3.size * feat3.dtype.itemsize
                           + (w_scale.size + w_shift.size) * w_t.dtype.itemsize
                           + 2 * B * T * 4 + 2 * T * 4),
    )

    scale, shift = pl.pallas_call(
        functools.partial(_pool_linear_kernel, inv_hw=1.0 / float(HW)),
        out_shape=(jax.ShapeDtypeStruct((B, T), jnp.float32),
                   jax.ShapeDtypeStruct((B, T), jnp.float32)),
        grid=(n_chunks,),
        in_specs=[
            pl.BlockSpec((B, C_enc, s_chunk), lambda k: (0, 0, k)),
            pl.BlockSpec((C_enc, T), lambda k: (0, 0)),
            pl.BlockSpec((C_enc, T), lambda k: (0, 0)),
            pl.BlockSpec((1, T), lambda k: (0, 0)),
            pl.BlockSpec((1, T), lambda k: (0, 0)),
        ],
        out_specs=(
            pl.BlockSpec((B, T), lambda k: (0, 0)),
            pl.BlockSpec((B, T), lambda k: (0, 0)),
        ),
        scratch_shapes=[pltpu.VMEM((B, C_enc), jnp.float32)],
        compiler_params=pltpu.CompilerParams(
            dimension_semantics=("arbitrary",)),     # spatial reduction axis
        cost_estimate=cost1,
    )(feat3, w_scale, w_shift, b_scale, b_shift)

    # ---- Stage 2: FiLM apply over (B*T, Hd*Wd), sublane-full row tiles -----
    disp2 = disparity.reshape(R, S)
    scale2 = scale.reshape(R, 1)
    shift2 = shift.reshape(R, 1)

    row_bytes = S * max(disparity.dtype.itemsize, 4) * 6      # in+out tiles, buffered
    row_cap = max(8, min(1024,
                         (vmem_budget_bytes // max(row_bytes, 1)) // 8 * 8))
    r_tile = _pick_tile(R, 8, row_cap)
    n_rows = R // r_tile

    cost2 = pl.CostEstimate(
        flops=int(2 * R * S),
        transcendentals=0,
        bytes_accessed=int(2 * R * S * disparity.dtype.itemsize + 2 * R * 4),
    )

    out2 = pl.pallas_call(
        _film_apply_kernel,
        out_shape=jax.ShapeDtypeStruct((R, S), disparity.dtype),
        grid=(n_rows,),
        in_specs=[
            pl.BlockSpec((r_tile, 1), lambda r: (r, 0)),
            pl.BlockSpec((r_tile, 1), lambda r: (r, 0)),
            pl.BlockSpec((r_tile, S), lambda r: (r, 0)),
        ],
        out_specs=pl.BlockSpec((r_tile, S), lambda r: (r, 0)),
        compiler_params=pltpu.CompilerParams(
            dimension_semantics=("parallel",)),
        cost_estimate=cost2,
    )(scale2, shift2, disp2)

    return out2.reshape(B, T, Hd, Wd)


if __name__ == "__main__":
    # Small shapes consistent with the module.
    B, C_enc, H, W = 2, 32, 16, 16        # encoded_dim = 32
    T, Hd, Wd = 4, 16, 16                 # target_channels = 4

    key = jax.random.PRNGKey(0)
    k_feat, k_disp, k_w, k_b = jax.random.split(key, 4)

    features = jax.random.normal(k_feat, (B, C_enc, H, W), dtype=jnp.float32)
    disparity = jax.random.normal(k_disp, (B, T, Hd, Wd), dtype=jnp.float32)

    # nn.Linear(encoded_dim, 2*target_channels) default init:
    # uniform(-1/sqrt(fan_in), 1/sqrt(fan_in)) for weight and bias.
    bound = 1.0 / (C_enc ** 0.5)
    weight = jax.random.uniform(k_w, (2 * T, C_enc), jnp.float32, -bound, bound)
    bias = jax.random.uniform(k_b, (2 * T,), jnp.float32, -bound, bound)

    out = film_forward(features, disparity, weight, bias)
    out = jax.block_until_ready(out)

    # Pure-JAX reference check of the forward semantics.
    pooled = jnp.mean(features, axis=(2, 3))                       # (B, C_enc)
    ss = pooled @ weight.T + bias                                  # (B, 2T)
    scale_ref, shift_ref = ss[:, :T], ss[:, T:]
    ref = (disparity * scale_ref[:, :, None, None]
           + shift_ref[:, :, None, None])
    assert out.shape == (B, T, Hd, Wd)
    assert jnp.allclose(out, ref, atol=1e-5, rtol=1e-5)

    print("KERNEL_OK")
</pallas_src>

<mosaic_0001>
module attributes {stable_mosaic.version = 11 : i64} {
  func.func @_pool_linear_kernel(%arg0: i32, %arg1: memref<2x32x256xf32, #tpu.memory_space<vmem>>, %arg2: memref<32x4xf32, #tpu.memory_space<vmem>>, %arg3: memref<32x4xf32, #tpu.memory_space<vmem>>, %arg4: memref<1x4xf32, #tpu.memory_space<vmem>>, %arg5: memref<1x4xf32, #tpu.memory_space<vmem>>, %arg6: memref<2x4xf32, #tpu.memory_space<vmem>>, %arg7: memref<2x4xf32, #tpu.memory_space<vmem>>, %arg8: memref<2x32xf32, #tpu.memory_space<vmem>>) attributes {dimension_semantics = [#tpu.dimension_semantics<arbitrary>], iteration_bounds = array<i64: 1>, scalar_prefetch = 0 : i64, scratch_operands = 1 : i64, tpu.core_type = #tpu.core_type<tc>, window_params = [{transform_indices = @transform_0, window_bounds = array<i64: 2, 32, 256>}, {pipeline_mode = #tpu.pipeline_mode<synchronous>, transform_indices = @transform_1, window_bounds = array<i64: 32, 4>}, {pipeline_mode = #tpu.pipeline_mode<synchronous>, transform_indices = @transform_2, window_bounds = array<i64: 32, 4>}, {pipeline_mode = #tpu.pipeline_mode<synchronous>, transform_indices = @transform_3, window_bounds = array<i64: 1, 4>}, {pipeline_mode = #tpu.pipeline_mode<synchronous>, transform_indices = @transform_4, window_bounds = array<i64: 1, 4>}, {pipeline_mode = #tpu.pipeline_mode<synchronous>, transform_indices = @transform_5, window_bounds = array<i64: 2, 4>}, {pipeline_mode = #tpu.pipeline_mode<synchronous>, transform_indices = @transform_6, window_bounds = array<i64: 2, 4>}]} {
    %c0_i32 = arith.constant 0 : i32
    %0 = arith.cmpi eq, %arg0, %c0_i32 : i32
    %1 = arith.extui %0 : i1 to i32
    %c0_i32_0 = arith.constant 0 : i32
    %2 = arith.cmpi ne, %1, %c0_i32_0 : i32
    scf.if %2 {
      %cst_9 = arith.constant 0.000000e+00 : f32
      %11 = vector.broadcast %cst_9 : f32 to vector<2x32xf32>
      %c0_10 = arith.constant 0 : index
      %c0_11 = arith.constant 0 : index
      %12 = vector.load %arg8[%c0_10, %c0_11] : memref<2x32xf32, #tpu.memory_space<vmem>>, vector<2x32xf32>
      tpu.vector_store %arg8[%c0_10, %c0_11], %11 {strides = array<i32>} : memref<2x32xf32, #tpu.memory_space<vmem>>, vector<2x32xf32>,
    } else {
    }
    %c0 = arith.constant 0 : index
    %c0_1 = arith.constant 0 : index
    %3 = vector.load %arg8[%c0, %c0_1] : memref<2x32xf32, #tpu.memory_space<vmem>>, vector<2x32xf32>
    %c0_2 = arith.constant 0 : index
    %c0_3 = arith.constant 0 : index
    %c0_4 = arith.constant 0 : index
    %4 = vector.load %arg1[%c0_2, %c0_3, %c0_4] : memref<2x32x256xf32, #tpu.memory_space<vmem>>, vector<2x32x256xf32>
    %cst = arith.constant dense<0.000000e+00> : vector<2x32xf32>
    %5 = vector.multi_reduction <add>, %4, %cst [2] : vector<2x32x256xf32> to vector<2x32xf32>
    %6 = arith.addf %3, %5 : vector<2x32xf32>
    %c0_5 = arith.constant 0 : index
    %c0_6 = arith.constant 0 : index
    %7 = vector.load %arg8[%c0_5, %c0_6] : memref<2x32xf32, #tpu.memory_space<vmem>>, vector<2x32xf32>
    tpu.vector_store %arg8[%c0_5, %c0_6], %6 {strides = array<i32>} : memref<2x32xf32, #tpu.memory_space<vmem>>, vector<2x32xf32>,
    %c0_i32_7 = arith.constant 0 : i32
    %8 = arith.cmpi eq, %arg0, %c0_i32_7 : i32
    %9 = arith.extui %8 : i1 to i32
    %c0_i32_8 = arith.constant 0 : i32
    %10 = arith.cmpi ne, %9, %c0_i32_8 : i32
    scf.if %10 {
      %c0_9 = arith.constant 0 : index
      %c0_10 = arith.constant 0 : index
      %11 = vector.load %arg8[%c0_9, %c0_10] : memref<2x32xf32, #tpu.memory_space<vmem>>, vector<2x32xf32>
      %cst_11 = arith.constant 3.906250e-03 : f32
      %12 = vector.broadcast %cst_11 : f32 to vector<2x32xf32>
      %13 = arith.mulf %11, %12 : vector<2x32xf32>
      %c0_12 = arith.constant 0 : index
      %c0_13 = arith.constant 0 : index
      %14 = vector.load %arg2[%c0_12, %c0_13] : memref<32x4xf32, #tpu.memory_space<vmem>>, vector<32x4xf32>
      %cst_14 = arith.constant dense<0.000000e+00> : vector<2x4xf32>
      %15 = tpu.matmul %13, %14, %cst_14 {dimension_numbers = #tpu.dot_dimension_numbers<[1], [0], [0], [1], [0, 0, 1, 1], [], []>} : vector<2x32xf32>, vector<32x4xf32>, vector<2x4xf32> -> vector<2x4xf32>
      %c0_15 = arith.constant 0 : index
      %c0_16 = arith.constant 0 : index
      %16 = vector.load %arg4[%c0_15, %c0_16] : memref<1x4xf32, #tpu.memory_space<vmem>>, vector<1x4xf32>
      %17 = vector.broadcast %16 : vector<1x4xf32> to vector<2x4xf32>
      %18 = arith.addf %15, %17 : vector<2x4xf32>
      %c0_17 = arith.constant 0 : index
      %c0_18 = arith.constant 0 : index
      %19 = vector.load %arg6[%c0_17, %c0_18] : memref<2x4xf32, #tpu.memory_space<vmem>>, vector<2x4xf32>
      tpu.vector_store %arg6[%c0_17, %c0_18], %18 {strides = array<i32>} : memref<2x4xf32, #tpu.memory_space<vmem>>, vector<2x4xf32>,
      %c0_19 = arith.constant 0 : index
      %c0_20 = arith.constant 0 : index
      %20 = vector.load %arg3[%c0_19, %c0_20] : memref<32x4xf32, #tpu.memory_space<vmem>>, vector<32x4xf32>
      %cst_21 = arith.constant dense<0.000000e+00> : vector<2x4xf32>
      %21 = tpu.matmul %13, %20, %cst_21 {dimension_numbers = #tpu.dot_dimension_numbers<[1], [0], [0], [1], [0, 0, 1, 1], [], []>} : vector<2x32xf32>, vector<32x4xf32>, vector<2x4xf32> -> vector<2x4xf32>
      %c0_22 = arith.constant 0 : index
      %c0_23 = arith.constant 0 : index
      %22 = vector.load %arg5[%c0_22, %c0_23] : memref<1x4xf32, #tpu.memory_space<vmem>>, vector<1x4xf32>
      %23 = vector.broadcast %22 : vector<1x4xf32> to vector<2x4xf32>
      %24 = arith.addf %21, %23 : vector<2x4xf32>
      %c0_24 = arith.constant 0 : index
      %c0_25 = arith.constant 0 : index
      %25 = vector.load %arg7[%c0_24, %c0_25] : memref<2x4xf32, #tpu.memory_space<vmem>>, vector<2x4xf32>
      tpu.vector_store %arg7[%c0_24, %c0_25], %24 {strides = array<i32>} : memref<2x4xf32, #tpu.memory_space<vmem>>, vector<2x4xf32>,
    } else {
    }
    return
  }
  func.func @transform_0(%arg0: i32) -> (i32, i32, i32) {
    %c0_i32 = arith.constant 0 : i32
    %c0_i32_0 = arith.constant 0 : i32
    %c0_i32_1 = arith.constant 0 : i32
    return %c0_i32, %c0_i32_0, %arg0 : i32, i32, i32
  }
  func.func @transform_1(%arg0: i32) -> (i32, i32) {
    %c0_i32 = arith.constant 0 : i32
    %c0_i32_0 = arith.constant 0 : i32
    %c0_i32_1 = arith.constant 0 : i32
    return %c0_i32, %c0_i32_0 : i32, i32
  }
  func.func @transform_2(%arg0: i32) -> (i32, i32) {
    %c0_i32 = arith.constant 0 : i32
    %c0_i32_0 = arith.constant 0 : i32
    %c0_i32_1 = arith.constant 0 : i32
    return %c0_i32, %c0_i32_0 : i32, i32
  }
  func.func @transform_3(%arg0: i32) -> (i32, i32) {
    %c0_i32 = arith.constant 0 : i32
    %c0_i32_0 = arith.constant 0 : i32
    %c0_i32_1 = arith.constant 0 : i32
    return %c0_i32, %c0_i32_0 : i32, i32
  }
  func.func @transform_4(%arg0: i32) -> (i32, i32) {
    %c0_i32 = arith.constant 0 : i32
    %c0_i32_0 = arith.constant 0 : i32
    %c0_i32_1 = arith.constant 0 : i32
    return %c0_i32, %c0_i32_0 : i32, i32
  }
  func.func @transform_5(%arg0: i32) -> (i32, i32) {
    %c0_i32 = arith.constant 0 : i32
    %c0_i32_0 = arith.constant 0 : i32
    %c0_i32_1 = arith.constant 0 : i32
    return %c0_i32, %c0_i32_0 : i32, i32
  }
  func.func @transform_6(%arg0: i32) -> (i32, i32) {
    %c0_i32 = arith.constant 0 : i32
    %c0_i32_0 = arith.constant 0 : i32
    %c0_i32_1 = arith.constant 0 : i32
    return %c0_i32, %c0_i32_0 : i32, i32
  }
}

</mosaic_0001>

<bundles_post_ra>
// kernel: tpu_custom_call.1
= control target key start
LH: loop header
LB: loop body
LE: loop exit
PB: predicated region body
PF: predicated region fallthrough
CT: control target
= control target key end

     0   :  { %12 = vsyncpa [#allocation4], 0  ;;  %s540_s0 = inlined_call_operand.hbm [shape: f32[2,32,256], index: 0, kind: input, shape index: {}]   ;;  %s541_s1 = inlined_call_operand.vmem [shape: f32[32,4], index: 1, kind: input, shape index: {}]   ;;  %s542_s2 = inlined_call_operand.vmem [shape: f32[32,4], index: 2, kind: input, shape index: {}]   ;;  %s543_s3 = inlined_call_operand.vmem [shape: f32[1,4], index: 3, kind: input, shape index: {}]   ;;  %s544_s4 = inlined_call_operand.vmem [shape: f32[1,4], index: 4, kind: input, shape index: {}]   ;;  %s545_s5 = inlined_call_operand.hbm [shape: f32[2,4], index: 5, kind: output, shape index: {0}]   ;;  %s546_s6 = inlined_call_operand.hbm [shape: f32[2,4], index: 6, kind: output, shape index: {1}]  }
   0x1   :  { %13 = vsyncpa [#allocation5], 0 }
   0x2   :  { %14 = vsyncpa [#allocation8], 0  ;;  %s457_s21 = smov [#allocation3]  }
   0x3   :  { %s20_s22 = sshll.u32 %s457_s21, 4  ;;  %s21_s22 = int_to_ptr.vmem [resolvable:$true] %s20_s22 }
   0x4   :  { %s399_s23 = scalar_lea.vmem %s21_s22, 2048  ;;  %p404_p1 = scmp.lt.s32.totalorder %s21_s22, %s21_s22 }
   0x5   :  { %p400_p0 = scmp.ne.s32.totalorder %s21_s22, %s399_s23  ;;  %p405_p2 = scmp.lt.s32.totalorder %s399_s23, %s399_s23 }
   0x7   :  { %p406_p3 = por %p405_p2, %p404_p1 }
   0x9   :  { %p407_p4 = pnand %p406_p3, %p400_p0 }
   0xb   :  { %410 = shalt.err (!%p407_p4)
}
   0xc   :  { %s458_s24 = smov 256   ;;  %s459_s25 = smov 16  }
   0xd   :  { %26 = dma.hbm_to_vmem [thread:$0]  %s540_s0, 2048, %s21_s22, [#allocation4], %s458_s24, %s458_s24, %s459_s25  }
   0xe   :  { %451 = dma.done.wait [#allocation4], 2048  }
   0xf   :  { %452 = vsyncadd [#allocation4], 4294965248  ;;  %v53_v0 = vld [vmem:[#allocation3 + $0x40] sm:$0xff]  ;;  %v54_v1 = vld [vmem:[#allocation3 + $0x48] sm:$0xff]  ;;  %vm42_vm0 = vcmask 254976   ;;  %v460_v24 = vmov 0.0   ;;  %v93_v33 = vlaneseq }
  0x10   :  { %v45_v2 = vld [vmem:[#allocation3] sm:$0xff]  ;;  %v73_v3 = vadd.f32 %v54_v1, %v53_v0  ;;  %v46_v4 = vld [vmem:[#allocation3 + $0x8] sm:$0xff]  ;;  %v55_v5 = vld [vmem:[#allocation3 + $0x50] sm:$0xff]  ;;  %43 = vst.msk [vmem:[#allocation2] sm:$0x3] %vm42_vm0, %v460_v24  ;;  %362 = vmatprep.subr.mxu0 %v460_v24  ;;  %373 = vmatprep.subr.mxu1 %v460_v24  ;;  %vm461_vm1 = vmmov 0  }
  0x11   :  { %v56_v6 = vld [vmem:[#allocation3 + $0x58] sm:$0xff]  ;;  %v61_v7 = vadd.f32 %v46_v4, %v45_v2  ;;  %v47_v8 = vld [vmem:[#allocation3 + $0x10] sm:$0xff]  ;;  %v57_v12 = vld [vmem:[#allocation3 + $0x60] sm:$0xff]  ;;  %370 = vmatprep.mubr.msk.f32.mxu0 %vm461_vm1, %v460_v24  ;;  %381 = vmatprep.mubr.msk.f32.mxu1 %vm461_vm1, %v460_v24  ;;  %v94_v34 = vand.u32 127, %v93_v33  ;;  %v96_v39 = vshrl.u32 %v93_v33, 7  ;;  %vm104_vm2 = vcmask 130112  }
  0x12   :  { %v48_v9 = vld [vmem:[#allocation3 + $0x18] sm:$0xff]  ;;  %74 = vadd.xlane.f32.xlu1 %v73_v3  ;;  %v76_v10 = vadd.f32 %v56_v6, %v55_v5  ;;  %v58_v13 = vld [vmem:[#allocation3 + $0x68] sm:$0xff]  ;;  %v49_v14 = vld [vmem:[#allocation3 + $0x20] sm:$0xff]  ;;  %vm111_vm3 = vcmask 195712   ;;  %vm118_vm4 = vcmask 261312   ;;  %vm139_vm5 = vcmask 1041409  }
  0x13   :  { %62 = vadd.xlane.f32.xlu0 %v61_v7  ;;  %v64_v11 = vadd.f32 %v48_v9, %v47_v8  ;;  %v50_v15 = vld [vmem:[#allocation3 + $0x28] sm:$0xff]  ;;  %v79_v16 = vadd.f32 %v58_v13, %v57_v12  ;;  %v59_v18 = vld [vmem:[#allocation3 + $0x70] sm:$0xff]  ;;  %v60_v19 = vld [vmem:[#allocation3 + $0x78] sm:$0xff]  ;;  %v99_v37 = vadd.s32 4294967288, %v94_v34  ;;  %v106_v38 = vadd.s32 4294967280, %v94_v34  ;;  %s462_s21 = smov [#allocation6]  }
  0x14   :  { %v67_v17 = vadd.f32 %v50_v15, %v49_v14  ;;  %v51_v20 = vld [vmem:[#allocation3 + $0x30] sm:$0xff]  ;;  %v52_v21 = vld [vmem:[#allocation3 + $0x38] sm:$0xff]  ;;  %v82_v22 = vadd.f32 %v60_v19, %v59_v18  ;;  %v151_v29 = vld [vmem:[%s541_s1 + $0x8] sm:$0xff]  ;;  %v113_v43 = vadd.s32 4294967272, %v94_v34  ;;  %v97_v45 = vsub.s32 %v94_v34, %v96_v39  ;;  %s325_s22 = sshll.u32 %s462_s21, 4  ;;  %s463_s23 = smov [#allocation7]   ;;  %s326_s22 = int_to_ptr.vmem [resolvable:$true] %s325_s22 }
  0x15   :  { %v70_v23 = vadd.f32 %v52_v21, %v51_v20  ;;  %v153_v25 = vld [vmem:[%s541_s1 + $0x18] sm:$0xff]  ;;  %v152_v27 = vld [vmem:[%s541_s1 + $0x10] sm:$0xff]  ;;  %v238_v30 = vld [vmem:[%s542_s2 + $0x8] sm:$0xff]  ;;  %v102_v41 = vsub.s32 %v99_v37, %v96_v39  ;;  %v109_v44 = vsub.s32 %v106_v38, %v96_v39  ;;  %vm161_vm6 = vcmask 261120   ;;  %s335_s24 = sshll.u32 %s463_s23, 4  ;;  %p416_p6 = scmp.lt.s32.totalorder %s326_s22, %s326_s22  ;;  %s336_s24 = int_to_ptr.vmem [resolvable:$true] %s335_s24 }
  0x16   :  { %77 = vadd.xlane.f32.xlu1 %v76_v10  ;;  %v240_v26 = vld [vmem:[%s542_s2 + $0x18] sm:$0xff]  ;;  %363 = vmatpush3.msra.mxu0 %v153_v25  ;;  %v239_v28 = vld [vmem:[%s542_s2 + $0x10] sm:$0xff]  ;;  %v150_v31 = vld [vmem:[%s541_s1] sm:$0xff]  ;;  %v116_v49 = vsub.s32 %v113_v43, %v96_v39  ;;  %vm235_vm7 = vcmask 25600  }
  0x17   :  { %65 = vadd.xlane.f32.xlu0 %v64_v11  ;;  %374 = vmatpush3.msra.mxu1 %v240_v26  ;;  %v237_v32 = vld [vmem:[%s542_s2] sm:$0xff] }
  0x18   :  { %364 = vmatprep.subr.mxu0 %v460_v24  ;;  %375 = vmatprep.subr.mxu1 %v460_v24  ;;  %v44_v0 = vld [vmem:[#allocation2] sm:$0x3] }
  0x19   :  { %365 = vmatpush3.msra.mxu0 %v152_v27  ;;  %376 = vmatpush3.msra.mxu1 %v239_v28  ;;  %v348_v6 = vld [vmem:[%s543_s3] ss:$0 sm:$0xff]  ;;  %s411_s3 = scalar_lea.vmem %s326_s22, 32 }
  0x1a   :  { %80 = vadd.xlane.f32.xlu1 %v79_v16  ;;  %366 = vmatprep.subr.mxu0 %v460_v24  ;;  %v350_v7 = vld [vmem:[%s544_s4] ss:$0 sm:$0xff]  ;;  %p412_p5 = scmp.ne.s32.totalorder %s326_s22, %s411_s3  ;;  %p417_p7 = scmp.lt.s32.totalorder %s411_s3, %s411_s3 }
  0x1b   :  { %68 = vadd.xlane.f32.xlu0 %v67_v17  ;;  %377 = vmatprep.subr.mxu1 %v460_v24 }
  0x1c   :  { %367 = vmatpush3.msra.mxu0 %v151_v29  ;;  %378 = vmatpush3.msra.mxu1 %v238_v30  ;;  %p418_p8 = por %p417_p7, %p416_p6 }
  0x1d   :  { %368 = vmatprep.subr.mxu0 %v460_v24  ;;  %379 = vmatprep.subr.mxu1 %v460_v24 }
  0x1e   :  { %83 = vadd.xlane.f32.xlu1 %v82_v22  ;;  %369 = vmatpush3.msra.mxu0 %v150_v31  ;;  %p419_p9 = pnand %p418_p8, %p412_p5 }
  0x1f   :  { %71 = vadd.xlane.f32.xlu0 %v70_v23  ;;  %380 = vmatpush3.msra.mxu1 %v237_v32 }
  0x9b   :  { %v75_v35 = vpop.xlane.xlu1 %74 }
  0x9c   :  { %v63_v36 = vpop.xlane.xlu0 %62  ;;  %v123_v52 = vrot.slane %v75_v35, %v97_v45 }
  0x9d   :  { %v98_v54 = vrot.slane %v63_v36, %v97_v45 }
  0x9f   :  { %v78_v40 = vpop.xlane.xlu1 %77 }
  0xa0   :  { %v66_v42 = vpop.xlane.xlu0 %65  ;;  %v127_v47 = vrot.slane %v78_v40, %v102_v41 }
  0xa1   :  { %v103_v50 = vrot.slane %v66_v42, %v102_v41 }
  0xa2   :  { %v128_v56 = vsel %vm104_vm2, %v127_v47, %v123_v52 }
  0xa3   :  { %v81_v46 = vpop.xlane.xlu1 %80  ;;  %v105_v59 = vsel %vm104_vm2, %v103_v50, %v98_v54 }
  0xa4   :  { %v69_v48 = vpop.xlane.xlu0 %68  ;;  %v132_v51 = vrot.slane %v81_v46, %v109_v44 }
  0xa5   :  { %v110_v53 = vrot.slane %v69_v48, %v109_v44 }
  0xa6   :  { %v133_v60 = vsel %vm111_vm3, %v132_v51, %v128_v56 }
  0xa7   :  { %v84_v55 = vpop.xlane.xlu1 %83  ;;  %v112_v62 = vsel %vm111_vm3, %v110_v53, %v105_v59 }
  0xa8   :  { %v137_v57 = vrot.slane %v84_v55, %v116_v49  ;;  %v72_v58 = vpop.xlane.xlu0 %71 }
  0xa9   :  { %v117_v61 = vrot.slane %v72_v58, %v116_v49 }
  0xaa   :  { %v138_v63 = vsel %vm118_vm4, %v137_v57, %v133_v60 }
  0xab   :  { %v119_v1 = vsel %vm118_vm4, %v117_v61, %v112_v62 }
  0xac   :  { %v140_v2 = vsel %vm139_vm5, %v138_v63, %v119_v1 }
  0xad   :  { %v142_v3 = vadd.f32 %v140_v2, %v44_v0 }
  0xaf   :  { %144 = vst.msk [vmem:[#allocation2] sm:$0x3] %vm42_vm0, %v142_v3 }
  0xb6   :  { %v148_v4 = vld [vmem:[#allocation2] sm:$0x3] }
  0xb7   :  { %v149_v5 = vmul.f32 0.00390625, %v148_v4 }
  0xb9   :  { %371 = vmatmul.mubr.msk.f32.vlgmr.msra.gmra.mxu0 %vm161_vm6, %v149_v5  ;;  %382 = vmatmul.mubr.msk.f32.vlgmr.msra.gmra.mxu1 %vm161_vm6, %v149_v5 }
 0x179   :  { %v231_v8 = vpop.f32.mrf.mxu0  ;;  %v314_v9 = vpop.f32.mrf.mxu1 }
 0x17a   :  { %v232_v10 = vadd.f32 %v348_v6, %v231_v8  ;;  %v315_v11 = vadd.f32 %v350_v7, %v314_v9 }
 0x17b   :  { %v372_v12 = vpop.f32.mrf.mxu0  ;;  %v383_v13 = vpop.f32.mrf.mxu1 }
 0x17c   :  { %236 = vst.msk [vmem:[#allocation6] sm:$0x3] %vm235_vm7, %v232_v10  ;;  %318 = vst.msk [vmem:[#allocation7] sm:$0x3] %vm235_vm7, %v315_v11 }
 0x17d   :  { %422 = shalt.err (!%p419_p9)
}
 0x17e   :  { %328 = dma.vmem_to_hbm [thread:$0]  %s326_s22, 32, %s545_s5, [#allocation5]  }
 0x17f   :  { %s431_s26 = scalar_lea.vmem %s336_s24, 32  ;;  %p436_p11 = scmp.lt.s32.totalorder %s336_s24, %s336_s24 }
 0x180   :  { %p432_p10 = scmp.ne.s32.totalorder %s336_s24, %s431_s26  ;;  %p437_p12 = scmp.lt.s32.totalorder %s431_s26, %s431_s26 }
 0x182   :  { %p438_p13 = por %p437_p12, %p436_p11 }
 0x184   :  { %p439_p0 = pnand %p438_p13, %p432_p10 }
 0x186   :  { %442 = shalt.err (!%p439_p0)
}
 0x187   :  { %338 = dma.vmem_to_hbm [thread:$0]  %s336_s24, 32, %s546_s6, [#allocation8]  }
 0x188   :  { %453 = dma.done.wait [#allocation5], 32  }
 0x189   :  { %454 = vsyncadd [#allocation5], 4294967264 }
 0x18a   :  { %455 = dma.done.wait [#allocation8], 32  }
 0x18b   :  { %456 = vsyncadd [#allocation8], 4294967264 }
 0x18c   :  { %345 = vsyncpa [#allocation4], 1 }
 0x18d   :  { %346 = vsyncpa [#allocation5], 1 }
 0x18e   :  { %347 = vsyncpa [#allocation8], 1 }

</bundles_post_ra>
